<compile_context>
chip_gen: v7x
topology: tpu7x:2x2x1
jax: 0.10.0
libtpu: 0.0.40
codegen_flags: <defaults>
</compile_context>

<pallas_src>
import jax
import jax.numpy as jnp
from jax.experimental import pallas as pl
from jax.experimental.pallas import tpu as pltpu


_DEFAULT_BLOCK_B = 2048  # 2 MiB x-block at S*F = 256 f32; safe on v5e/v6e/v7x.


def attention_kernel(x_ref, we_ref, sel_ref, gth_ref, b_ref, o_ref):
    # x_ref:   (TB, S*F)   lane-dense input slab
    # we_ref:  (S*F, S)    we[s*F + f, s'] = w[f] * [s == s']   (weighted segment-sum)
    # sel_ref: (S, S*F)    sel[s, s*F + f] = 1                  (broadcast a over F)
    # gth_ref: (S*F, F)    gth[s*F + f, f'] = [f == f']         (segment-sum over S)
    # b_ref:   (1, S)      bias
    # o_ref:   (TB, F)     output
    x2 = x_ref[...].astype(jnp.float32)                       # (TB, S*F)

    # eij[t, s] = sum_f x[t, s, f] * w[f]   -> one MXU matmul (weight folded in)
    e = jnp.dot(x2, we_ref[...], preferred_element_type=jnp.float32)   # (TB, S)
    e = jnp.tanh(e + b_ref[...])
    a = jnp.exp(e)
    # exact PyTorch order: divide by the row-sum, THEN add 1e-10
    a = a / jnp.sum(a, axis=1, keepdims=True) + 1e-10                   # (TB, S)

    # Broadcast a over the F lanes of each step, weight x, reduce over steps.
    a_exp = jnp.dot(a, sel_ref[...], preferred_element_type=jnp.float32)  # (TB, S*F)
    weighted = x2 * a_exp                                                  # dense VPU
    out = jnp.dot(weighted, gth_ref[...], preferred_element_type=jnp.float32)  # (TB, F)
    o_ref[...] = out.astype(o_ref.dtype)


def attention_forward(x, weight, bias, *, block_b=_DEFAULT_BLOCK_B):
    """x: (B, S, F) f32; weight: (F, 1) f32; bias: (S,) f32 -> (B, F) f32."""
    B, S, F = x.shape
    SF = S * F

    # Per-step batch tile: as big as VMEM comfortably allows, never larger than
    # B.  When it tiles (TB < B) keep it a multiple of 8 so the (TB, *) blocks
    # satisfy the (8, 128) sublane rule.
    tb = min(block_b, B)
    if tb < B:
        tb = max(8, (tb // 8) * 8)
    b_pad = pl.cdiv(B, tb) * tb

    # Lane-dense 2-D view of x (free, contiguous reshape); pad batch rows with
    # zeros (per-row math is independent; padded rows give finite garbage that
    # is sliced off below).
    x2d = x.reshape(B, SF)
    if b_pad != B:
        x2d = jnp.pad(x2d, ((0, b_pad - B), (0, 0)))

    # Constant matrices (tiny; resident in VMEM across all grid steps).
    dt = x.dtype
    w_flat = weight.reshape(F).astype(dt)
    eye_s = jnp.eye(S, dtype=dt)
    we = (eye_s[:, None, :] * w_flat[None, :, None]).reshape(SF, S)  # (S*F, S)
    sel = jnp.repeat(eye_s, F, axis=1)                               # (S, S*F)
    gth = jnp.tile(jnp.eye(F, dtype=dt), (S, 1))                     # (S*F, F)
    b2d = bias.reshape(1, S).astype(dt)                              # (1, S)

    out = pl.pallas_call(
        attention_kernel,
        out_shape=jax.ShapeDtypeStruct((b_pad, F), x.dtype),
        grid_spec=pltpu.PrefetchScalarGridSpec(
            num_scalar_prefetch=0,
            grid=(b_pad // tb,),
            in_specs=[
                pl.BlockSpec((tb, SF), lambda i: (i, 0)),   # TB batch rows of x
                pl.BlockSpec((SF, S), lambda i: (0, 0)),    # shared weight matrix
                pl.BlockSpec((S, SF), lambda i: (0, 0)),    # shared broadcast matrix
                pl.BlockSpec((SF, F), lambda i: (0, 0)),    # shared gather matrix
                pl.BlockSpec((1, S), lambda i: (0, 0)),     # shared bias
            ],
            out_specs=pl.BlockSpec((tb, F), lambda i: (i, 0)),
        ),
        compiler_params=pltpu.CompilerParams(
            dimension_semantics=("parallel",),        # shards across v7x's 2 TCs
            vmem_limit_bytes=32 * 1024 * 1024,        # ~13 MiB used; ample headroom
        ),
    )(x2d, we, sel, gth, b2d)

    return out[:B] if b_pad != B else out


def reference_forward(x, weight, bias):
    """Pure-JAX reference mirroring the PyTorch code."""
    B, S, F = x.shape
    eij = (x.reshape(-1, F) @ weight).reshape(B, S)
    eij = jnp.tanh(eij + bias)
    a = jnp.exp(eij)
    a = a / jnp.sum(a, axis=1, keepdims=True) + 1e-10
    return jnp.sum(x * a[:, :, None], axis=1)


if __name__ == "__main__":
    # Module config: feature_dim = 32, step_dim = 8, bias = True.
    feature_dim, step_dim, batch = 32, 8, 2

    key = jax.random.PRNGKey(0)
    k_x, k_w, k_x2, k_x3 = jax.random.split(key, 4)

    x = jax.random.normal(k_x, (batch, step_dim, feature_dim), dtype=jnp.float32)

    # Deterministic xavier_uniform-style init for the (feature_dim, 1) weight.
    bound = (6.0 / (feature_dim + 1)) ** 0.5
    weight = jax.random.uniform(
        k_w, (feature_dim, 1), minval=-bound, maxval=bound, dtype=jnp.float32
    )
    bias = jnp.zeros((step_dim,), dtype=jnp.float32)  # nn.Parameter(torch.zeros(step_dim))

    # Small case (B=2): single-step grid, TB == B.
    out = jax.block_until_ready(attention_forward(x, weight, bias))
    ref = reference_forward(x, weight, bias)
    assert out.shape == (batch, feature_dim)
    assert jnp.allclose(out, ref, atol=1e-5, rtol=1e-4), "mismatch vs reference (B=2)"

    # Multi-step + padded path (B=300, TB=128 -> padded to 384 rows, 3 steps).
    big_b = 300
    x_big = jax.random.normal(k_x2, (big_b, step_dim, feature_dim), dtype=jnp.float32)
    out_big = jax.block_until_ready(attention_forward(x_big, weight, bias, block_b=128))
    ref_big = reference_forward(x_big, weight, bias)
    assert out_big.shape == (big_b, feature_dim)
    assert jnp.allclose(out_big, ref_big, atol=1e-5, rtol=1e-4), "mismatch vs reference (B=300)"

    # Default-tile path (B=5000, TB=2048 -> padded to 6144 rows, 3 steps).
    huge_b = 5000
    x_huge = jax.random.normal(k_x3, (huge_b, step_dim, feature_dim), dtype=jnp.float32)
    out_huge = jax.block_until_ready(attention_forward(x_huge, weight, bias))
    ref_huge = reference_forward(x_huge, weight, bias)
    assert out_huge.shape == (huge_b, feature_dim)
    assert jnp.allclose(out_huge, ref_huge, atol=1e-5, rtol=1e-4), "mismatch vs reference (B=5000)"

    print("KERNEL_OK")
</pallas_src>

<mosaic_0001>
module attributes {stable_mosaic.version = 11 : i64} {
  func.func @attention_kernel(%arg0: i32, %arg1: memref<2x256xf32, #tpu.memory_space<vmem>>, %arg2: memref<256x8xf32, #tpu.memory_space<vmem>>, %arg3: memref<8x256xf32, #tpu.memory_space<vmem>>, %arg4: memref<256x32xf32, #tpu.memory_space<vmem>>, %arg5: memref<1x8xf32, #tpu.memory_space<vmem>>, %arg6: memref<2x32xf32, #tpu.memory_space<vmem>>) attributes {dimension_semantics = [#tpu.dimension_semantics<parallel>], iteration_bounds = array<i64: 1>, scalar_prefetch = 0 : i64, scratch_operands = 0 : i64, tpu.core_type = #tpu.core_type<tc>, window_params = [{transform_indices = @transform_0, window_bounds = array<i64: 2, 256>}, {pipeline_mode = #tpu.pipeline_mode<synchronous>, transform_indices = @transform_1, window_bounds = array<i64: 256, 8>}, {pipeline_mode = #tpu.pipeline_mode<synchronous>, transform_indices = @transform_2, window_bounds = array<i64: 8, 256>}, {pipeline_mode = #tpu.pipeline_mode<synchronous>, transform_indices = @transform_3, window_bounds = array<i64: 256, 32>}, {pipeline_mode = #tpu.pipeline_mode<synchronous>, transform_indices = @transform_4, window_bounds = array<i64: 1, 8>}, {transform_indices = @transform_5, window_bounds = array<i64: 2, 32>}]} {
    %c0 = arith.constant 0 : index
    %c0_0 = arith.constant 0 : index
    %0 = vector.load %arg1[%c0, %c0_0] : memref<2x256xf32, #tpu.memory_space<vmem>>, vector<2x256xf32>
    %c0_1 = arith.constant 0 : index
    %c0_2 = arith.constant 0 : index
    %1 = vector.load %arg2[%c0_1, %c0_2] : memref<256x8xf32, #tpu.memory_space<vmem>>, vector<256x8xf32>
    %cst = arith.constant dense<0.000000e+00> : vector<2x8xf32>
    %2 = tpu.matmul %0, %1, %cst {dimension_numbers = #tpu.dot_dimension_numbers<[1], [0], [0], [1], [0, 0, 1, 1], [], []>} : vector<2x256xf32>, vector<256x8xf32>, vector<2x8xf32> -> vector<2x8xf32>
    %c0_3 = arith.constant 0 : index
    %c0_4 = arith.constant 0 : index
    %3 = vector.load %arg5[%c0_3, %c0_4] : memref<1x8xf32, #tpu.memory_space<vmem>>, vector<1x8xf32>
    %4 = vector.broadcast %3 : vector<1x8xf32> to vector<2x8xf32>
    %5 = arith.addf %2, %4 : vector<2x8xf32>
    %6 = math.tanh %5 : vector<2x8xf32>
    %7 = math.exp %6 : vector<2x8xf32>
    %cst_5 = arith.constant dense<0.000000e+00> : vector<2xf32>
    %8 = vector.multi_reduction <add>, %7, %cst_5 [1] : vector<2x8xf32> to vector<2xf32>
    %9 = vector.shape_cast %8 : vector<2xf32> to vector<2x1xf32>
    %10 = vector.broadcast %9 : vector<2x1xf32> to vector<2x8xf32>
    %11 = arith.divf %7, %10 : vector<2x8xf32>
    %cst_6 = arith.constant 1.000000e-10 : f32
    %12 = vector.broadcast %cst_6 : f32 to vector<2x8xf32>
    %13 = arith.addf %11, %12 : vector<2x8xf32>
    %c0_7 = arith.constant 0 : index
    %c0_8 = arith.constant 0 : index
    %14 = vector.load %arg3[%c0_7, %c0_8] : memref<8x256xf32, #tpu.memory_space<vmem>>, vector<8x256xf32>
    %cst_9 = arith.constant dense<0.000000e+00> : vector<2x256xf32>
    %15 = tpu.matmul %13, %14, %cst_9 {dimension_numbers = #tpu.dot_dimension_numbers<[1], [0], [0], [1], [0, 0, 1, 1], [], []>} : vector<2x8xf32>, vector<8x256xf32>, vector<2x256xf32> -> vector<2x256xf32>
    %16 = arith.mulf %0, %15 : vector<2x256xf32>
    %c0_10 = arith.constant 0 : index
    %c0_11 = arith.constant 0 : index
    %17 = vector.load %arg4[%c0_10, %c0_11] : memref<256x32xf32, #tpu.memory_space<vmem>>, vector<256x32xf32>
    %cst_12 = arith.constant dense<0.000000e+00> : vector<2x32xf32>
    %18 = tpu.matmul %16, %17, %cst_12 {dimension_numbers = #tpu.dot_dimension_numbers<[1], [0], [0], [1], [0, 0, 1, 1], [], []>} : vector<2x256xf32>, vector<256x32xf32>, vector<2x32xf32> -> vector<2x32xf32>
    %c0_13 = arith.constant 0 : index
    %c0_14 = arith.constant 0 : index
    %19 = vector.load %arg6[%c0_13, %c0_14] : memref<2x32xf32, #tpu.memory_space<vmem>>, vector<2x32xf32>
    tpu.vector_store %arg6[%c0_13, %c0_14], %18 {strides = array<i32>} : memref<2x32xf32, #tpu.memory_space<vmem>>, vector<2x32xf32>,
    return
  }
  func.func @transform_0(%arg0: i32) -> (i32, i32) {
    %c0_i32 = arith.constant 0 : i32
    %c0_i32_0 = arith.constant 0 : i32
    return %arg0, %c0_i32 : i32, i32
  }
  func.func @transform_1(%arg0: i32) -> (i32, i32) {
    %c0_i32 = arith.constant 0 : i32
    %c0_i32_0 = arith.constant 0 : i32
    %c0_i32_1 = arith.constant 0 : i32
    return %c0_i32, %c0_i32_0 : i32, i32
  }
  func.func @transform_2(%arg0: i32) -> (i32, i32) {
    %c0_i32 = arith.constant 0 : i32
    %c0_i32_0 = arith.constant 0 : i32
    %c0_i32_1 = arith.constant 0 : i32
    return %c0_i32, %c0_i32_0 : i32, i32
  }
  func.func @transform_3(%arg0: i32) -> (i32, i32) {
    %c0_i32 = arith.constant 0 : i32
    %c0_i32_0 = arith.constant 0 : i32
    %c0_i32_1 = arith.constant 0 : i32
    return %c0_i32, %c0_i32_0 : i32, i32
  }
  func.func @transform_4(%arg0: i32) -> (i32, i32) {
    %c0_i32 = arith.constant 0 : i32
    %c0_i32_0 = arith.constant 0 : i32
    %c0_i32_1 = arith.constant 0 : i32
    return %c0_i32, %c0_i32_0 : i32, i32
  }
  func.func @transform_5(%arg0: i32) -> (i32, i32) {
    %c0_i32 = arith.constant 0 : i32
    %c0_i32_0 = arith.constant 0 : i32
    return %arg0, %c0_i32 : i32, i32
  }
}

</mosaic_0001>

<bundles_post_ra>
// kernel: tpu_custom_call.1
= control target key start
LH: loop header
LB: loop body
LE: loop exit
PB: predicated region body
PF: predicated region fallthrough
CT: control target
= control target key end

     0   :  { %v65_v3 = vlaneseq  ;;  %v539_v8 = vmov 1983009808   ;;  %s797_s0 = inlined_call_operand.vmem [shape: f32[2,256], index: 0, kind: input, shape index: {}]   ;;  %s798_s1 = inlined_call_operand.vmem [shape: f32[256,8], index: 1, kind: input, shape index: {}]   ;;  %s799_s2 = inlined_call_operand.vmem [shape: f32[8,256], index: 2, kind: input, shape index: {}]   ;;  %s800_s3 = inlined_call_operand.vmem [shape: f32[256,32], index: 3, kind: input, shape index: {}]   ;;  %s801_s4 = inlined_call_operand.vmem [shape: f32[1,8], index: 4, kind: input, shape index: {}]   ;;  %s802_s5 = inlined_call_operand.hbm [shape: f32[2,32], index: 5, kind: output, shape index: {}]  }
   0x1   :  { %v38_v0 = vld [vmem:[%s798_s1 + $0x80] sm:$0xff]  ;;  %v39_v1 = vld [vmem:[%s798_s1 + $0x88] sm:$0xff]  ;;  %v40_v6 = vld [vmem:[%s798_s1 + $0x90] sm:$0xff]  ;;  %v63_v9 = vunpack.c.l.s4 %v539_v8 }
   0x2   :  { %v22_v2 = vld [vmem:[%s798_s1] sm:$0xff]  ;;  %v442_v4 = vpack.c.bf16 %v39_v1, %v38_v0  ;;  %v23_v5 = vld [vmem:[%s798_s1 + $0x8] sm:$0xff]  ;;  %v41_v7 = vld [vmem:[%s798_s1 + $0x98] sm:$0xff]  ;;  %v66_v17 = vshrl.u32 %v65_v3, 7 }
   0x3   :  { %v444_v10 = vpack.c.bf16 %v23_v5, %v22_v2  ;;  %v446_v11 = vpack.c.bf16 %v41_v7, %v40_v6  ;;  %v24_v12 = vld [vmem:[%s798_s1 + $0x10] sm:$0xff]  ;;  %v25_v13 = vld [vmem:[%s798_s1 + $0x18] sm:$0xff]  ;;  %v42_v14 = vld [vmem:[%s798_s1 + $0xa0] sm:$0xff]  ;;  %v64_v16 = vunpack.c.0.s8 %v63_v9 }
   0x4   :  { %443 = vmatprep.subr.bf16.mxu0 %v442_v4  ;;  %v43_v15 = vld [vmem:[%s798_s1 + $0xa8] sm:$0xff]  ;;  %v448_v18 = vpack.c.bf16 %v25_v13, %v24_v12  ;;  %v26_v20 = vld [vmem:[%s798_s1 + $0x20] sm:$0xff]  ;;  %v44_v22 = vld [vmem:[%s798_s1 + $0xb0] sm:$0xff] }
   0x5   :  { %445 = vmatpush3.bf16.msra.mxu0 %v444_v10  ;;  %v450_v19 = vpack.c.bf16 %v43_v15, %v42_v14  ;;  %v27_v21 = vld [vmem:[%s798_s1 + $0x28] sm:$0xff]  ;;  %v45_v23 = vld [vmem:[%s798_s1 + $0xb8] sm:$0xff]  ;;  %v614_v24 = vsub.s32 %v64_v16, %v66_v17  ;;  %v28_v27 = vld [vmem:[%s798_s1 + $0x30] sm:$0xff] }
   0x6   :  { %447 = vmatprep.subr.bf16.mxu0 %v446_v11  ;;  %v452_v25 = vpack.c.bf16 %v27_v21, %v26_v20  ;;  %v454_v26 = vpack.c.bf16 %v45_v23, %v44_v22  ;;  %v29_v28 = vld [vmem:[%s798_s1 + $0x38] sm:$0xff]  ;;  %v46_v29 = vld [vmem:[%s798_s1 + $0xc0] sm:$0xff]  ;;  %v47_v30 = vld [vmem:[%s798_s1 + $0xc8] sm:$0xff] }
   0x7   :  { %v631_v31 = vld [vmem:[%s797_s0] sm:$0xf] }
   0x8   :  { %v68_v32 = vrot.slane %v631_v31, %v614_v24 }
   0x9   :  { %449 = vmatpush3.bf16.msra.mxu0 %v448_v18 }
   0xa   :  { %451 = vmatprep.subr.bf16.mxu0 %v450_v19 }
   0xb   :  { %10 = vsyncpa [#allocation3], 0  ;;  %v456_v33 = vpack.c.bf16 %v29_v28, %v28_v27  ;;  %v458_v34 = vpack.c.bf16 %v47_v30, %v46_v29  ;;  %v30_v35 = vld [vmem:[%s798_s1 + $0x40] sm:$0xff]  ;;  %v31_v36 = vld [vmem:[%s798_s1 + $0x48] sm:$0xff]  ;;  %v69_v37 = vcombine.high %v68_v32, %v68_v32  ;;  %vm145_vm0 = vcmask 58368  }
   0xc   :  { %v48_v38 = vld [vmem:[%s798_s1 + $0xd0] sm:$0xff]  ;;  %v49_v39 = vld [vmem:[%s798_s1 + $0xd8] sm:$0xff]  ;;  %v460_v40 = vpack.c.bf16 %v31_v36, %v30_v35  ;;  %v50_v44 = vld [vmem:[%s798_s1 + $0xe0] sm:$0xff]  ;;  %v540_v4 = vmov 0.0   ;;  %vm154_vm1 = vcmask 64512   ;;  %vm354_vm2 = vcmask 254976  }
   0xd   :  { %453 = vmatpush3.bf16.msra.mxu0 %v452_v25  ;;  %136 = vmatprep.mubr.f32.mxu0 %v69_v37  ;;  %v462_v41 = vpack.c.bf16 %v49_v39, %v48_v38  ;;  %v32_v42 = vld [vmem:[%s798_s1 + $0x50] sm:$0xff]  ;;  %v33_v43 = vld [vmem:[%s798_s1 + $0x58] sm:$0xff]  ;;  %v51_v45 = vld [vmem:[%s798_s1 + $0xe8] sm:$0xff] }
   0xe   :  { %455 = vmatprep.subr.bf16.mxu0 %v454_v26  ;;  %v464_v46 = vpack.c.bf16 %v33_v43, %v32_v42  ;;  %v466_v47 = vpack.c.bf16 %v51_v45, %v50_v44  ;;  %v34_v48 = vld [vmem:[%s798_s1 + $0x60] sm:$0xff]  ;;  %v35_v49 = vld [vmem:[%s798_s1 + $0x68] sm:$0xff]  ;;  %v52_v50 = vld [vmem:[%s798_s1 + $0xf0] sm:$0xff]  ;;  %222 = vmatprep.mubr.f32.mxu1 %v540_v4 }
   0xf   :  { %v53_v51 = vld [vmem:[%s798_s1 + $0xf8] sm:$0xff]  ;;  %v468_v52 = vpack.c.bf16 %v35_v49, %v34_v48  ;;  %v36_v54 = vld [vmem:[%s798_s1 + $0x70] sm:$0xff]  ;;  %v370_v58 = vld [vmem:[%s801_s4] ss:$0 sm:$0xff] }
  0x10   :  { %v470_v53 = vpack.c.bf16 %v53_v51, %v52_v50  ;;  %v37_v55 = vld [vmem:[%s798_s1 + $0x78] sm:$0xff]  ;;  %v153_v2 = vld [vmem:[%s799_s2 + $0x8] sm:$0xff]  ;;  %v152_v3 = vld [vmem:[%s799_s2] sm:$0xff]  ;;  %s541_s2 = smov [#allocation2]  }
  0x11   :  { %457 = vmatpush3.bf16.msra.mxu0 %v456_v33  ;;  %v472_v56 = vpack.c.bf16 %v37_v55, %v36_v54  ;;  %158 = vmatprep.subr.mxu1 %v153_v2  ;;  %v257_v5 = vld [vmem:[%s800_s3 + $0x80] sm:$0xff]  ;;  %v258_v6 = vld [vmem:[%s800_s3 + $0x88] sm:$0xff]  ;;  %v259_v12 = vld [vmem:[%s800_s3 + $0x90] sm:$0xff]  ;;  %s362_s17 = sshll.u32 %s541_s2, 4  ;;  %s363_s17 = int_to_ptr.vmem [resolvable:$true] %s362_s17 }
  0x12   :  { %459 = vmatprep.subr.bf16.mxu0 %v458_v34  ;;  %159 = vmatpush1.msra.mxu1 %v152_v3  ;;  %v474_v7 = vpack.c.bf16 %v258_v6, %v257_v5  ;;  %v241_v9 = vld [vmem:[%s800_s3] sm:$0xff]  ;;  %v242_v10 = vld [vmem:[%s800_s3 + $0x8] sm:$0xff]  ;;  %v260_v13 = vld [vmem:[%s800_s3 + $0x98] sm:$0xff]  ;;  %p520_p1 = scmp.lt.s32.totalorder %s363_s17, %s363_s17 }
  0x13   :  { %v476_v15 = vpack.c.bf16 %v242_v10, %v241_v9  ;;  %v478_v17 = vpack.c.bf16 %v260_v13, %v259_v12  ;;  %v243_v18 = vld [vmem:[%s800_s3 + $0x10] sm:$0xff]  ;;  %v244_v19 = vld [vmem:[%s800_s3 + $0x18] sm:$0xff]  ;;  %v261_v20 = vld [vmem:[%s800_s3 + $0xa0] sm:$0xff] }
  0x14   :  { %475 = vmatprep.subr.bf16.mxu1 %v474_v7  ;;  %v262_v21 = vld [vmem:[%s800_s3 + $0xa8] sm:$0xff]  ;;  %v480_v22 = vpack.c.bf16 %v244_v19, %v243_v18  ;;  %v245_v25 = vld [vmem:[%s800_s3 + $0x20] sm:$0xff]  ;;  %v263_v27 = vld [vmem:[%s800_s3 + $0xb0] sm:$0xff] }
  0x15   :  { %461 = vmatpush3.bf16.msra.mxu0 %v460_v40  ;;  %v482_v23 = vpack.c.bf16 %v262_v21, %v261_v20  ;;  %v246_v26 = vld [vmem:[%s800_s3 + $0x28] sm:$0xff]  ;;  %v264_v28 = vld [vmem:[%s800_s3 + $0xb8] sm:$0xff]  ;;  %v265_v34 = vld [vmem:[%s800_s3 + $0xc0] sm:$0xff] }
  0x16   :  { %463 = vmatprep.subr.bf16.mxu0 %v462_v41  ;;  %v484_v29 = vpack.c.bf16 %v246_v26, %v245_v25  ;;  %v486_v30 = vpack.c.bf16 %v264_v28, %v263_v27  ;;  %v248_v33 = vld [vmem:[%s800_s3 + $0x38] sm:$0xff]  ;;  %v266_v35 = vld [vmem:[%s800_s3 + $0xc8] sm:$0xff]  ;;  %v249_v38 = vld [vmem:[%s800_s3 + $0x40] sm:$0xff] }
  0x17   :  { %v490_v37 = vpack.c.bf16 %v266_v35, %v265_v34  ;;  %v250_v39 = vld [vmem:[%s800_s3 + $0x48] sm:$0xff]  ;;  %v267_v41 = vld [vmem:[%s800_s3 + $0xd0] sm:$0xff]  ;;  %v268_v42 = vld [vmem:[%s800_s3 + $0xd8] sm:$0xff] }
  0x18   :  { %v492_v40 = vpack.c.bf16 %v250_v39, %v249_v38  ;;  %v494_v43 = vpack.c.bf16 %v268_v42, %v267_v41  ;;  %v251_v44 = vld [vmem:[%s800_s3 + $0x50] sm:$0xff]  ;;  %v252_v45 = vld [vmem:[%s800_s3 + $0x58] sm:$0xff]  ;;  %v270_v48 = vld [vmem:[%s800_s3 + $0xe8] sm:$0xff] }
  0x19   :  { %465 = vmatpush3.bf16.msra.mxu0 %v464_v46  ;;  %v496_v46 = vpack.c.bf16 %v252_v45, %v251_v44  ;;  %v253_v50 = vld [vmem:[%s800_s3 + $0x60] sm:$0xff]  ;;  %v254_v51 = vld [vmem:[%s800_s3 + $0x68] sm:$0xff]  ;;  %v272_v54 = vld [vmem:[%s800_s3 + $0xf8] sm:$0xff] }
  0x1a   :  { %467 = vmatprep.subr.bf16.mxu0 %v466_v47  ;;  %v269_v47 = vld [vmem:[%s800_s3 + $0xe0] sm:$0xff]  ;;  %v255_v55 = vld [vmem:[%s800_s3 + $0x70] sm:$0xff] }
  0x1b   :  { %v498_v49 = vpack.c.bf16 %v270_v48, %v269_v47 }
  0x1d   :  { %469 = vmatpush3.bf16.msra.mxu0 %v468_v52  ;;  %v500_v52 = vpack.c.bf16 %v254_v51, %v253_v50 }
  0x1e   :  { %471 = vmatprep.subr.bf16.mxu0 %v470_v53  ;;  %v271_v53 = vld [vmem:[%s800_s3 + $0xf0] sm:$0xff] }
  0x21   :  { %473 = vmatpush3.bf16.msra.mxu0 %v472_v56  ;;  %v502_v56 = vpack.c.bf16 %v272_v54, %v271_v53 }
  0x24   :  { %137 = vmatmul.mubr.f32.vlgmr.msra.gmra.mrb[0].mxu0 %v68_v32  ;;  %v247_v32 = vld [vmem:[%s800_s3 + $0x30] sm:$0xff] }
  0x25   :  { %v488_v36 = vpack.c.bf16 %v248_v33, %v247_v32 }
  0xf7   :  { %v404_v57 = vpop.f32.mrb[0].mxu0 }
  0xf8   :  { %v405_v59 = vpop.f32.mrb[1].mxu0 }
  0xf9   :  { %v406_v60 = vadd.f32 %v405_v59, %v404_v57  ;;  %v256_v57 = vld [vmem:[%s800_s3 + $0x78] sm:$0xff]  ;;  %s515_s3 = scalar_lea.vmem %s363_s17, 32 }
  0xfa   :  { %p516_p0 = scmp.ne.s32.totalorder %s363_s17, %s515_s3  ;;  %p521_p2 = scmp.lt.s32.totalorder %s515_s3, %s515_s3 }
  0xfb   :  { %v139_v61 = vadd.f32 %v406_v60, %v370_v58  ;;  %v504_v58 = vpack.c.bf16 %v256_v57, %v255_v55 }
  0xfc   :  { %p522_p3 = por %p521_p2, %p520_p1 }
  0xfd   :  { %509 = vtanh.f32 %v139_v61 }
  0xfe   :  { %p523_p4 = pnand %p522_p3, %p516_p0 }
 0x107   :  { %v510_v62 = vpop.eup %509 }
 0x108   :  { %v143_v63 = vmul.f32 1.442695, %v510_v62 }
 0x10a   :  { %511 = vpow2.f32 %v143_v63 }
 0x114   :  { %v512_v0 = vpop.eup %511 }
 0x115   :  { %v146_v1 = vsel %vm145_vm0, %v512_v0, 0.0 }
 0x116   :  { %147 = vadd.xlane.f32.xlu0 %v146_v1 }
 0x1a3   :  { %v148_v8 = vpop.xlane.xlu0 %147 }
 0x1a4   :  { %513 = vrcp.f32 %v148_v8 }
 0x1ae   :  { %v514_v11 = vpop.eup %513 }
 0x1af   :  { %v150_v14 = vmul.f32 %v514_v11, %v512_v0 }
 0x1b1   :  { %v151_v16 = vadd.f32 1e-10, %v150_v14 }
 0x1b3   :  { %371 = vmatmul.mubr.msk.f32.vlgmr.msra.gmra.mrb[0].mxu1 %vm154_vm1, %v151_v16 }
 0x1b4   :  { %477 = vmatpush3.bf16.msra.mxu1 %v476_v15 }
 0x1b5   :  { %479 = vmatprep.subr.bf16.mxu1 %v478_v17 }
 0x1b8   :  { %481 = vmatpush3.bf16.msra.mxu1 %v480_v22 }
 0x1b9   :  { %483 = vmatprep.subr.bf16.mxu1 %v482_v23 }
 0x1bc   :  { %485 = vmatpush3.bf16.msra.mxu1 %v484_v29 }
 0x1bd   :  { %487 = vmatprep.subr.bf16.mxu1 %v486_v30 }
 0x1c0   :  { %489 = vmatpush3.bf16.msra.mxu1 %v488_v36 }
 0x1c1   :  { %491 = vmatprep.subr.bf16.mxu1 %v490_v37 }
 0x1c4   :  { %493 = vmatpush3.bf16.msra.mxu1 %v492_v40 }
 0x1c5   :  { %495 = vmatprep.subr.bf16.mxu1 %v494_v43 }
 0x1c8   :  { %497 = vmatpush3.bf16.msra.mxu1 %v496_v46 }
 0x1c9   :  { %499 = vmatprep.subr.bf16.mxu1 %v498_v49 }
 0x1cc   :  { %501 = vmatpush3.bf16.msra.mxu1 %v500_v52 }
 0x1cd   :  { %503 = vmatprep.subr.bf16.mxu1 %v502_v56 }
 0x1d0   :  { %505 = vmatpush3.bf16.msra.mxu1 %v504_v58 }
 0x286   :  { %v224_v59 = vpop.f32.mrb[0].mxu1 }
 0x287   :  { %v226_v60 = vpop.f32.mrb[1].mxu1 }
 0x288   :  { %v231_v61 = vcombine.low %v224_v59, %v226_v60 }
 0x28a   :  { %v238_v62 = vrot.slane %v231_v61, %v614_v24 }
 0x28c   :  { %v240_v63 = vmul.f32 %v238_v62, %v631_v31 }
 0x28e   :  { %v280_v0 = vrot.slane %v240_v63, %v614_v24 }
 0x290   :  { %v281_v1 = vcombine.high %v280_v0, %v280_v0 }
 0x292   :  { %348 = vmatprep.mubr.f32.mxu1 %v281_v1 }
 0x293   :  { %349 = vmatmul.mubr.f32.vlgmr.msra.gmra.mrb[2].mxu1 %v280_v0 }
 0x366   :  { %v439_v2 = vpop.f32.mrb[2].mxu1 }
 0x367   :  { %v440_v3 = vpop.f32.mrb[3].mxu1 }
 0x368   :  { %v441_v4 = vadd.f32 %v440_v3, %v439_v2 }
 0x36a   :  { %355 = vst.msk [vmem:[#allocation2] sm:$0x3] %vm354_vm2, %v441_v4 }
 0x36b   :  { %526 = shalt.err (!%p523_p4)
}
 0x36c   :  { %s527_s20 = scalar_lea.hbm %s802_s5, 32 }
 0x36d   :  { %p528_p5 = scmp.ne.s32.totalorder %s802_s5, %s527_s20  ;;  %p531_p6 = scmp.lt.u32.totalorder %s527_s20, %s802_s5 }
 0x36f   :  { %p533_p7 = pnand %p531_p6, %p528_p5 }
 0x371   :  { %536 = shalt.err (!%p533_p7)
}
 0x372   :  { %365 = dma.vmem_to_hbm [thread:$0]  %s363_s17, 32, %s802_s5, [#allocation3]  }
 0x373   :  { %537 = dma.done.wait [#allocation3], 32  }
 0x374   :  { %538 = vsyncadd [#allocation3], 4294967264 }
 0x375   :  { %369 = vsyncpa [#allocation3], 1 }

</bundles_post_ra>
